<compile_context>
chip_gen: v5e
topology: v5e:2x2
jax: 0.10.0
libtpu: 0.0.40
codegen_flags: <defaults>
</compile_context>

<pallas_src>
import functools
import math

import jax
import jax.numpy as jnp
from jax.experimental import pallas as pl
from jax.experimental.pallas import tpu as pltpu

_VMEM_LIMIT = 32 * 1024 * 1024  # safe on v5e/v6e/v7x; tiles below are << this


def _round_up(x, m):
    return ((x + m - 1) // m) * m


# ----------------------------------------------------------------------------
# Matmul: bf16 operands, f32 resident-output accumulation, M/N/K tiling
# ----------------------------------------------------------------------------

def _matmul_kernel(a_ref, b_ref, o_ref):
    @pl.when(pl.program_id(2) == 0)
    def _():
        o_ref[...] = jnp.zeros_like(o_ref)
    o_ref[...] += jnp.dot(a_ref[...], b_ref[...],
                          preferred_element_type=jnp.float32)


def pallas_matmul(a, b, tm=256, tn=256):
    """C = A @ B. bf16 MXU operands, f32 accumulation in the resident out block."""
    M, K = a.shape
    K2, N = b.shape
    assert K == K2
    a = a.astype(jnp.bfloat16)
    b = b.astype(jnp.bfloat16)

    # K tile: prefer one that divides the (128-aligned) K to limit padding.
    Kp = _round_up(K, 128)
    tk_ = 128
    for cand in (512, 384, 256, 128):
        if Kp % cand == 0:
            tk_ = cand
            break
    # M (sublane) tile: multiples of 16 keep bf16 (16,128) tiles clean.
    Mp = _round_up(M, 16)
    tm_ = min(tm, Mp)
    Mp = _round_up(Mp, tm_)
    # N (lane) tile: pad to 128 for lane-dense, unmasked stores.
    Np = _round_up(N, 128)
    tn_ = tn if Np % tn == 0 else 128
    tn_ = min(tn_, Np)

    if (Mp, Kp) != (M, K):
        a = jnp.pad(a, ((0, Mp - M), (0, Kp - K)))
    if (Kp, Np) != (K, N):
        b = jnp.pad(b, ((0, Kp - K), (0, Np - N)))

    out = pl.pallas_call(
        _matmul_kernel,
        out_shape=jax.ShapeDtypeStruct((Mp, Np), jnp.float32),
        grid=(Mp // tm_, Np // tn_, Kp // tk_),
        in_specs=[pl.BlockSpec((tm_, tk_), lambda i, j, k: (i, k)),
                  pl.BlockSpec((tk_, tn_), lambda i, j, k: (k, j))],
        out_specs=pl.BlockSpec((tm_, tn_), lambda i, j, k: (i, j)),
        compiler_params=pltpu.CompilerParams(
            dimension_semantics=("parallel", "parallel", "arbitrary"),
            vmem_limit_bytes=_VMEM_LIMIT),
    )(a, b)
    if (Mp, Np) != (M, N):
        out = out[:M, :N]
    return out


# ----------------------------------------------------------------------------
# BatchNorm (training-mode batch stats) + optional residual + ReLU, row-tiled, two-pass
# ----------------------------------------------------------------------------

def _bn_stats_kernel(x_ref, o_ref):
    @pl.when(pl.program_id(0) == 0)
    def _():
        o_ref[...] = jnp.zeros_like(o_ref)
    x = x_ref[...].astype(jnp.float32)
    s = jnp.sum(x, axis=0, keepdims=True)
    ss = jnp.sum(x * x, axis=0, keepdims=True)
    o_ref[...] += jnp.concatenate([s, ss], axis=0)


def _bn_apply_kernel(x_ref, stats_ref, g_ref, b_ref, o_ref, *, relu, inv_n, eps):
    s = stats_ref[...]
    mean = s[0:1, :] * inv_n
    var = s[1:2, :] * inv_n - mean * mean
    scale = g_ref[...] * jax.lax.rsqrt(var + eps)
    shift = b_ref[...] - mean * scale
    y = x_ref[...].astype(jnp.float32) * scale + shift
    if relu:
        y = jnp.maximum(y, 0.0)
    o_ref[...] = y.astype(o_ref.dtype)


def _bn_res_apply_kernel(x_ref, stats_ref, g_ref, b_ref, r_ref, o_ref, *,
                         relu, inv_n, eps):
    s = stats_ref[...]
    mean = s[0:1, :] * inv_n
    var = s[1:2, :] * inv_n - mean * mean
    scale = g_ref[...] * jax.lax.rsqrt(var + eps)
    shift = b_ref[...] - mean * scale
    y = x_ref[...].astype(jnp.float32) * scale + shift + r_ref[...].astype(jnp.float32)
    if relu:
        y = jnp.maximum(y, 0.0)
    o_ref[...] = y.astype(o_ref.dtype)


def pallas_batchnorm(x, gamma, beta, residual=None, relu=True, eps=1e-5,
                     out_dtype=jnp.bfloat16, tp=512):
    P, C = x.shape
    Pp = _round_up(P, 16)
    tp_ = min(tp, Pp)
    Pp = _round_up(Pp, tp_)
    xp = jnp.pad(x, ((0, Pp - P), (0, 0))) if Pp != P else x

    # Pass 1: per-channel sum / sum-of-squares (zero-padded rows contribute nothing).
    stats = pl.pallas_call(
        _bn_stats_kernel,
        out_shape=jax.ShapeDtypeStruct((2, C), jnp.float32),
        grid=(Pp // tp_,),
        in_specs=[pl.BlockSpec((tp_, C), lambda i: (i, 0))],
        out_specs=pl.BlockSpec((2, C), lambda i: (0, 0)),
        compiler_params=pltpu.CompilerParams(
            dimension_semantics=("arbitrary",),
            vmem_limit_bytes=_VMEM_LIMIT),
    )(xp)

    inv_n = 1.0 / float(P)
    ins = [xp, stats, gamma, beta]
    specs = [pl.BlockSpec((tp_, C), lambda i: (i, 0)),
             pl.BlockSpec((2, C), lambda i: (0, 0)),
             pl.BlockSpec((1, C), lambda i: (0, 0)),
             pl.BlockSpec((1, C), lambda i: (0, 0))]
    if residual is None:
        kern = functools.partial(_bn_apply_kernel, relu=relu, inv_n=inv_n, eps=eps)
    else:
        rp = jnp.pad(residual, ((0, Pp - P), (0, 0))) if Pp != P else residual
        ins.append(rp)
        specs.append(pl.BlockSpec((tp_, C), lambda i: (i, 0)))
        kern = functools.partial(_bn_res_apply_kernel, relu=relu, inv_n=inv_n, eps=eps)

    out = pl.pallas_call(
        kern,
        out_shape=jax.ShapeDtypeStruct((Pp, C), out_dtype),
        grid=(Pp // tp_,),
        in_specs=specs,
        out_specs=pl.BlockSpec((tp_, C), lambda i: (i, 0)),
        compiler_params=pltpu.CompilerParams(
            dimension_semantics=("parallel",),
            vmem_limit_bytes=_VMEM_LIMIT),
    )(*ins)
    return out[:P] if Pp != P else out


# ----------------------------------------------------------------------------
# Maxpool reduction (row-tiled) and fused tail (avgpool + fc + ScaleToBounds, GP prior)
# ----------------------------------------------------------------------------

def _max_kernel(x_ref, o_ref):
    o_ref[...] = jnp.max(x_ref[...], axis=0).astype(o_ref.dtype)


def pallas_maxreduce(patches, tp=512):
    KK, P, C = patches.shape
    Pp = _round_up(P, 16)
    tp_ = min(tp, Pp)
    Pp = _round_up(Pp, tp_)
    if Pp != P:
        patches = jnp.pad(patches, ((0, 0), (0, Pp - P), (0, 0)))
    out = pl.pallas_call(
        _max_kernel,
        out_shape=jax.ShapeDtypeStruct((Pp, C), patches.dtype),
        grid=(Pp // tp_,),
        in_specs=[pl.BlockSpec((KK, tp_, C), lambda i: (0, i, 0))],
        out_specs=pl.BlockSpec((tp_, C), lambda i: (i, 0)),
        compiler_params=pltpu.CompilerParams(
            dimension_semantics=("parallel",),
            vmem_limit_bytes=_VMEM_LIMIT),
    )(patches)
    return out[:P] if Pp != P else out


def _head_kernel(x_ref, w_ref, b_ref, o_ref, *, d, lb, ub):
    # adaptive avgpool(1,1) + fc (+bias) + gpytorch ScaleToBounds (training mode)
    feat = jnp.mean(x_ref[...].astype(jnp.float32), axis=1)              # (N, C)
    logits = jnp.dot(feat, w_ref[...], preferred_element_type=jnp.float32) + b_ref[...]
    logits = logits[:, :d]                                               # drop lane padding
    mn = jnp.min(logits)
    mx = jnp.max(logits)
    scale = 0.95 * (ub - lb) / jnp.maximum(mx - mn, 1e-8)                # eps-guarded
    o_ref[...] = (logits - mn) * scale + 0.95 * lb


def _gp_kernel(x_ref, mean_ref, cov_ref, *, lengthscale, outputscale, mean_const):
    # GaussianProcessLayer.forward: ConstantMean + ScaleKernel(RBFKernel), per task d
    x = x_ref[...]                             # (D, B)
    diff = x[:, :, None] - x[:, None, :]       # (D, B, B)
    cov_ref[...] = outputscale * jnp.exp(-0.5 * jnp.square(diff / lengthscale))
    mean_ref[...] = jnp.full(mean_ref.shape, mean_const, jnp.float32)


def pallas_gp_prior(x, lengthscale, outputscale, mean_const):
    D, B = x.shape
    return pl.pallas_call(
        functools.partial(_gp_kernel, lengthscale=lengthscale,
                          outputscale=outputscale, mean_const=mean_const),
        out_shape=(jax.ShapeDtypeStruct((D, B), jnp.float32),
                   jax.ShapeDtypeStruct((D, B, B), jnp.float32)),
        grid=(1,),
        in_specs=[pl.BlockSpec((D, B), lambda i: (0, 0))],
        out_specs=(pl.BlockSpec((D, B), lambda i: (0, 0)),
                   pl.BlockSpec((D, B, B), lambda i: (0, 0, 0))),
    )(x)


# ----------------------------------------------------------------------------
# Plain-JAX glue (patch extraction, parameter setup, network wiring)
# ----------------------------------------------------------------------------

def im2col(x, kh, kw, stride, pad):
    """x: (N, H, W, C) bf16 -> patches (N*Ho*Wo, kh*kw*C) bf16."""
    # TODO(synk): a tap-accumulating Pallas conv (shifted-window index_maps) would avoid
    # materializing the kh*kw-expanded patch matrix in HBM; kept as bf16 im2col for now.
    N, H, W, C = x.shape
    xp = jnp.pad(x, ((0, 0), (pad, pad), (pad, pad), (0, 0)))
    Ho = (H + 2 * pad - kh) // stride + 1
    Wo = (W + 2 * pad - kw) // stride + 1
    cols = []
    for i in range(kh):
        for j in range(kw):
            cols.append(xp[:, i:i + stride * Ho:stride, j:j + stride * Wo:stride, :])
    patches = jnp.stack(cols, axis=3)                # (N, Ho, Wo, kh*kw, C)
    return patches.reshape(N * Ho * Wo, kh * kw * C), N, Ho, Wo


def conv_bn(x, w, gamma, beta, stride, pad, relu=True, residual=None):
    """conv (no bias) + BatchNorm(+residual)(+ReLU). w: (kh, kw, Cin, Cout)."""
    kh, kw, cin, cout = w.shape
    patches, N, Ho, Wo = im2col(x, kh, kw, stride, pad)
    y = pallas_matmul(patches, w.reshape(kh * kw * cin, cout))   # (N*Ho*Wo, Cout) f32
    res = None
    if residual is not None:
        res = residual.reshape(-1, residual.shape[-1])
    y = pallas_batchnorm(y, gamma, beta, residual=res, relu=relu)  # bf16
    return y.reshape(N, Ho, Wo, cout)


def maxpool_3x3_s2(x):
    N, H, W, C = x.shape
    xp = jnp.pad(x, ((0, 0), (1, 1), (1, 1), (0, 0)), constant_values=-jnp.inf)
    Ho = (H + 2 - 3) // 2 + 1
    Wo = (W + 2 - 3) // 2 + 1
    cols = [xp[:, i:i + 2 * Ho:2, j:j + 2 * Wo:2, :]
            for i in range(3) for j in range(3)]
    patches = jnp.stack(cols, axis=0).reshape(9, N * Ho * Wo, C)
    out = pallas_maxreduce(patches)
    return out.reshape(N, Ho, Wo, C)


def basic_block(x, p):
    identity = x
    out = conv_bn(x, p['conv1_w'], p['bn1_g'], p['bn1_b'],
                  stride=p['stride'], pad=1, relu=True)
    if 'down_w' in p:
        identity = conv_bn(x, p['down_w'], p['down_g'], p['down_b'],
                           stride=p['stride'], pad=0, relu=False)
    out = conv_bn(out, p['conv2_w'], p['bn2_g'], p['bn2_b'],
                  stride=1, pad=1, relu=True, residual=identity)
    return out


def init_params(key, in_channels, num_classes):
    keys = iter(jax.random.split(key, 40))

    def conv_w(cin, cout, k):
        fan_out = cout * k * k                        # kaiming_normal_, mode='fan_out'
        std = math.sqrt(2.0 / fan_out)
        return std * jax.random.normal(next(keys), (k, k, cin, cout), jnp.float32)

    params = {
        'conv1_w': conv_w(in_channels, 64, 7),
        'bn1_g': jnp.ones((1, 64), jnp.float32),
        'bn1_b': jnp.zeros((1, 64), jnp.float32),
    }

    def make_layer(inplanes, planes, blocks, stride):
        layer = []
        for b in range(blocks):
            s = stride if b == 0 else 1
            blk = {
                'stride': s,
                'conv1_w': conv_w(inplanes, planes, 3),
                'bn1_g': jnp.ones((1, planes), jnp.float32),
                'bn1_b': jnp.zeros((1, planes), jnp.float32),
                'conv2_w': conv_w(planes, planes, 3),
                'bn2_g': jnp.ones((1, planes), jnp.float32),
                'bn2_b': jnp.zeros((1, planes), jnp.float32),
            }
            if s != 1 or inplanes != planes:
                blk['down_w'] = conv_w(inplanes, planes, 1)
                blk['down_g'] = jnp.ones((1, planes), jnp.float32)
                blk['down_b'] = jnp.zeros((1, planes), jnp.float32)
            layer.append(blk)
            inplanes = planes
        return layer, inplanes

    inpl = 64
    params['layer1'], inpl = make_layer(inpl, 64, 2, 1)
    params['layer2'], inpl = make_layer(inpl, 128, 2, 2)
    params['layer3'], inpl = make_layer(inpl, 256, 2, 2)
    params['layer4'], inpl = make_layer(inpl, 512, 2, 2)

    bound = 1.0 / math.sqrt(512)
    params['fc_w'] = jax.random.uniform(next(keys), (512, num_classes),
                                        jnp.float32, -bound, bound)
    params['fc_b'] = jax.random.uniform(next(keys), (num_classes,),
                                        jnp.float32, -bound, bound)
    return params


def resnet18gp_forward(params, x_nchw, grid_bounds=(-10.0, 10.0)):
    # NCHW (PyTorch) -> NHWC (kernel layout); activations carried in bf16
    x = jnp.transpose(x_nchw, (0, 2, 3, 1)).astype(jnp.bfloat16)

    # stem
    x = conv_bn(x, params['conv1_w'], params['bn1_g'], params['bn1_b'],
                stride=2, pad=3, relu=True)
    x = maxpool_3x3_s2(x)

    # residual stages
    for lname in ('layer1', 'layer2', 'layer3', 'layer4'):
        for blk in params[lname]:
            x = basic_block(x, blk)

    # fused tail: avgpool -> fc(+bias) -> ScaleToBounds (one kernel)
    N, H, W, C = x.shape
    D = params['fc_w'].shape[1]
    Dp = _round_up(D, 128)                       # lane-dense fc weight
    wb = jnp.pad(params['fc_w'], ((0, 0), (0, Dp - D)))
    bb = jnp.pad(params['fc_b'][None, :], ((0, 0), (0, Dp - D)))
    scaled = pl.pallas_call(
        functools.partial(_head_kernel, d=D, lb=grid_bounds[0], ub=grid_bounds[1]),
        out_shape=jax.ShapeDtypeStruct((N, D), jnp.float32),
        grid=(1,),
        in_specs=[pl.BlockSpec((N, H * W, C), lambda i: (0, 0, 0)),
                  pl.BlockSpec((C, Dp), lambda i: (0, 0)),
                  pl.BlockSpec((1, Dp), lambda i: (0, 0))],
        out_specs=pl.BlockSpec((N, D), lambda i: (0, 0)),
    )(x.reshape(N, H * W, C), wb, bb)

    # .transpose(-1,-2).unsqueeze(-1) -> GP features (D, N, 1); trailing 1 handled in kernel
    gp_in = scaled.T                                                    # (D, N)

    # GP-layer hyperparameters at gpytorch default raw init (softplus(0) = ln 2)
    softplus0 = math.log(2.0)
    mean, covar = pallas_gp_prior(gp_in, lengthscale=softplus0,
                                  outputscale=softplus0, mean_const=0.0)
    return mean, covar                                                  # (D, N), (D, N, N)


# ----------------------------------------------------------------------------

if __name__ == "__main__":
    key = jax.random.PRNGKey(0)
    in_dim = 8        # ResNet18GP(in_dim=...) -> encoder num_classes / GP num_dim
    in_channels = 4
    pkey, xkey = jax.random.split(key)

    params = init_params(pkey, in_channels, in_dim)
    x = jax.random.normal(xkey, (2, in_channels, 16, 16), jnp.float32)

    mean, covar = resnet18gp_forward(params, x)
    jax.block_until_ready((mean, covar))
    assert mean.shape == (in_dim, 2) and covar.shape == (in_dim, 2, 2)
    print("KERNEL_OK")
</pallas_src>

<mosaic_0001>
module attributes {stable_mosaic.version = 11 : i64} {
  func.func @_matmul_kernel(%arg0: i32, %arg1: i32, %arg2: i32, %arg3: memref<128x256xbf16, #tpu.memory_space<vmem>>, %arg4: memref<256x128xbf16, #tpu.memory_space<vmem>>, %arg5: memref<128x128xf32, #tpu.memory_space<vmem>>) attributes {dimension_semantics = [#tpu.dimension_semantics<parallel>, #tpu.dimension_semantics<parallel>, #tpu.dimension_semantics<arbitrary>], iteration_bounds = array<i64: 1, 1, 1>, scalar_prefetch = 0 : i64, scratch_operands = 0 : i64, tpu.core_type = #tpu.core_type<tc>, window_params = [{transform_indices = @transform_0, window_bounds = array<i64: 128, 256>}, {transform_indices = @transform_1, window_bounds = array<i64: 256, 128>}, {transform_indices = @transform_2, window_bounds = array<i64: 128, 128>}]} {
    %c0_i32 = arith.constant 0 : i32
    %0 = arith.cmpi eq, %arg2, %c0_i32 : i32
    %1 = arith.extui %0 : i1 to i32
    %c0_i32_0 = arith.constant 0 : i32
    %2 = arith.cmpi ne, %1, %c0_i32_0 : i32
    scf.if %2 {
      %cst_8 = arith.constant 0.000000e+00 : f32
      %9 = vector.broadcast %cst_8 : f32 to vector<128x128xf32>
      %c0_9 = arith.constant 0 : index
      %c0_10 = arith.constant 0 : index
      %10 = vector.load %arg5[%c0_9, %c0_10] : memref<128x128xf32, #tpu.memory_space<vmem>>, vector<128x128xf32>
      tpu.vector_store %arg5[%c0_9, %c0_10], %9 {strides = array<i32>} : memref<128x128xf32, #tpu.memory_space<vmem>>, vector<128x128xf32>,
    } else {
    }
    %c0 = arith.constant 0 : index
    %c0_1 = arith.constant 0 : index
    %3 = vector.load %arg5[%c0, %c0_1] : memref<128x128xf32, #tpu.memory_space<vmem>>, vector<128x128xf32>
    %c0_2 = arith.constant 0 : index
    %c0_3 = arith.constant 0 : index
    %4 = vector.load %arg3[%c0_2, %c0_3] : memref<128x256xbf16, #tpu.memory_space<vmem>>, vector<128x256xbf16>
    %c0_4 = arith.constant 0 : index
    %c0_5 = arith.constant 0 : index
    %5 = vector.load %arg4[%c0_4, %c0_5] : memref<256x128xbf16, #tpu.memory_space<vmem>>, vector<256x128xbf16>
    %cst = arith.constant dense<0.000000e+00> : vector<128x128xf32>
    %6 = tpu.matmul %4, %5, %cst {dimension_numbers = #tpu.dot_dimension_numbers<[1], [0], [0], [1], [0, 0, 1, 1], [], []>} : vector<128x256xbf16>, vector<256x128xbf16>, vector<128x128xf32> -> vector<128x128xf32>
    %7 = arith.addf %3, %6 : vector<128x128xf32>
    %c0_6 = arith.constant 0 : index
    %c0_7 = arith.constant 0 : index
    %8 = vector.load %arg5[%c0_6, %c0_7] : memref<128x128xf32, #tpu.memory_space<vmem>>, vector<128x128xf32>
    tpu.vector_store %arg5[%c0_6, %c0_7], %7 {strides = array<i32>} : memref<128x128xf32, #tpu.memory_space<vmem>>, vector<128x128xf32>,
    return
  }
  func.func @transform_0(%arg0: i32, %arg1: i32, %arg2: i32) -> (i32, i32) {
    %c0_i32 = arith.constant 0 : i32
    return %arg0, %arg2 : i32, i32
  }
  func.func @transform_1(%arg0: i32, %arg1: i32, %arg2: i32) -> (i32, i32) {
    %c0_i32 = arith.constant 0 : i32
    return %arg2, %arg1 : i32, i32
  }
  func.func @transform_2(%arg0: i32, %arg1: i32, %arg2: i32) -> (i32, i32) {
    %c0_i32 = arith.constant 0 : i32
    return %arg0, %arg1 : i32, i32
  }
}

</mosaic_0001>

<bundles_post_ra>
// kernel: tpu_custom_call.1
= control target key start
LH: loop header
LB: loop body
LE: loop exit
PB: predicated region body
PF: predicated region fallthrough
CT: control target
= control target key end

     0   :  { %7 = vsyncpa [#allocation3], 0  ;;  %s753_s0 = inlined_call_operand.hbm [shape: bf16[128,256], index: 0, kind: input, shape index: {}]   ;;  %s754_s1 = inlined_call_operand.hbm [shape: bf16[256,128], index: 1, kind: input, shape index: {}]   ;;  %s755_s2 = inlined_call_operand.hbm [shape: f32[128,128], index: 2, kind: output, shape index: {}]  }
   0x1   :  { %8 = vsyncpa [#allocation6], 0 }
   0x2   :  { %9 = vsyncpa [#allocation4], 0  ;;  %s14_s11 = sshll.u32 %s753_s0, 4  ;;  %s716_s12 = smov [#allocation2]   ;;  %s15_s11 = int_to_ptr.hbm [resolvable:$true] %s14_s11 }
   0x3   :  { %s16_s13 = sshll.u32 %s716_s12, 4  ;;  %s27_s16 = sshll.u32 %s754_s1, 4  ;;  %s17_s13 = int_to_ptr.vmem [resolvable:$true] %s16_s13  ;;  %s28_s16 = int_to_ptr.hbm [resolvable:$true] %s27_s16 }
   0x4   :  { %s717_s17 = smov 128   ;;  %s718_s18 = smov 8  }
   0x5   :  { %22 = dma.hbm_to_vmem [thread:$0]  %s15_s11, 2048, %s17_s13, [#allocation3], %s717_s17, %s717_s17, %s718_s18  }
   0x6   :  { %s719_s19 = smov [#allocation5]   ;;  %s720_s21 = smov 64  }
   0x7   :  { %s29_s20 = sshll.u32 %s719_s19, 4  ;;  %s721_s0 = smov 4   ;;  %s30_s20 = int_to_ptr.vmem [resolvable:$true] %s29_s20 }
   0x8   :  { %35 = dma.hbm_to_vmem [thread:$0]  %s28_s16, 2048, %s30_s20, [#allocation6], %s720_s21, %s720_s21, %s721_s0  }
   0x9   :  { %710 = dma.done.wait [#allocation3], 2048  }
   0xa   :  { %711 = vsyncadd [#allocation3], 4294965248 }
   0xb   :  { %712 = dma.done.wait [#allocation6], 2048  }
   0xc   :  { %713 = vsyncadd [#allocation6], 4294965248  ;;  %v605_v0 = vld [vmem:[#allocation5 + $0x38] sm:$0xff]  ;;  %v604_v2 = vld [vmem:[#allocation5 + $0x30] sm:$0xff]  ;;  %s722_s1 = smov [#allocation7]   ;;  %s440_s25 = sshll.u32 %s755_s2, 4  ;;  %s441_s25 = int_to_ptr.hbm [resolvable:$true] %s440_s25 }
   0xd   :  { %v613_v1 = vld [vmem:[#allocation5 + $0x78] sm:$0xff]  ;;  %304 = vmatpush.bf16.msra.mxu0 %v605_v0  ;;  %614 = vmatpush.bf16.msra.mxu2 %v605_v0  ;;  %v612_v3 = vld [vmem:[#allocation5 + $0x70] sm:$0xff]  ;;  %v603_v4 = vld [vmem:[#allocation5 + $0x28] sm:$0xff]  ;;  %s438_s22 = sshll.u32 %s722_s1, 4  ;;  %s439_s22 = int_to_ptr.vmem [resolvable:$true] %s438_s22 }
   0xe   :  { %353 = vmatpush.bf16.msra.mxu1 %v613_v1  ;;  %622 = vmatpush.bf16.msra.mxu3 %v613_v1  ;;  %v611_v5 = vld [vmem:[#allocation5 + $0x68] sm:$0xff]  ;;  %v602_v6 = vld [vmem:[#allocation5 + $0x20] sm:$0xff]  ;;  %v601_v8 = vld [vmem:[#allocation5 + $0x18] sm:$0xff] }
   0xf   :  { %v610_v7 = vld [vmem:[#allocation5 + $0x60] sm:$0xff]  ;;  %v609_v9 = vld [vmem:[#allocation5 + $0x58] sm:$0xff]  ;;  %v600_v10 = vld [vmem:[#allocation5 + $0x10] sm:$0xff] }
  0x10   :  { %v608_v11 = vld [vmem:[#allocation5 + $0x50] sm:$0xff]  ;;  %v599_v12 = vld [vmem:[#allocation5 + $0x8] sm:$0xff]  ;;  %v598_v14 = vld [vmem:[#allocation5] sm:$0xff] }
  0x11   :  { %305 = vmatpush.bf16.msra.mxu0 %v604_v2  ;;  %615 = vmatpush.bf16.msra.mxu2 %v604_v2  ;;  %v607_v13 = vld [vmem:[#allocation5 + $0x48] sm:$0xff]  ;;  %v606_v15 = vld [vmem:[#allocation5 + $0x40] sm:$0xff]  ;;  %v464_v28 = vld [vmem:[#allocation2 + $0x10] sm:$0xf] }
  0x12   :  { %354 = vmatpush.bf16.msra.mxu1 %v612_v3  ;;  %623 = vmatpush.bf16.msra.mxu3 %v612_v3  ;;  %v456_v16 = vld [vmem:[#allocation2] sm:$0xf]  ;;  %v583_v17 = vld [vmem:[#allocation2 + $0x4] sm:$0xf0]  ;;  %v582_v20 = vld [vmem:[#allocation2 + $0x4] sm:$0xf] }
  0x13   :  { %v488_v18 = vld [vmem:[#allocation2 + $0x40] sm:$0xf]  ;;  %v591_v19 = vld [vmem:[#allocation2 + $0x44] sm:$0xf0]  ;;  %v458_v21 = vld [vmem:[#allocation2 + $0x8] sm:$0xf0]  ;;  %v457_v24 = vor.u32 %v583_v17, %v456_v16 }
  0x14   :  { %v590_v22 = vld [vmem:[#allocation2 + $0x44] sm:$0xf]  ;;  %v490_v23 = vld [vmem:[#allocation2 + $0x48] sm:$0xf0]  ;;  %v489_v25 = vor.u32 %v591_v19, %v488_v18  ;;  %v461_v26 = vor.u32 %v582_v20, %v458_v21  ;;  %v585_v29 = vld [vmem:[#allocation2 + $0x14] sm:$0xf0] }
  0x15   :  { %306 = vmatpush.bf16.msra.mxu0 %v603_v4  ;;  %616 = vmatpush.bf16.msra.mxu2 %v603_v4  ;;  %v493_v27 = vor.u32 %v590_v22, %v490_v23  ;;  %v496_v30 = vld [vmem:[#allocation2 + $0x50] sm:$0xf]  ;;  %v593_v31 = vld [vmem:[#allocation2 + $0x54] sm:$0xf0]  ;;  %v584_v32 = vld [vmem:[#allocation2 + $0x14] sm:$0xf]  ;;  %v465_v36 = vor.u32 %v585_v29, %v464_v28 }
  0x16   :  { %355 = vmatpush.bf16.msra.mxu1 %v611_v5  ;;  %624 = vmatpush.bf16.msra.mxu3 %v611_v5  ;;  %v466_v33 = vld [vmem:[#allocation2 + $0x18] sm:$0xf0]  ;;  %v592_v34 = vld [vmem:[#allocation2 + $0x54] sm:$0xf]  ;;  %v497_v37 = vor.u32 %v593_v31, %v496_v30  ;;  %v472_v40 = vld [vmem:[#allocation2 + $0x20] sm:$0xf] }
  0x17   :  { %v498_v35 = vld [vmem:[#allocation2 + $0x58] sm:$0xf0]  ;;  %v469_v38 = vor.u32 %v584_v32, %v466_v33  ;;  %v587_v41 = vld [vmem:[#allocation2 + $0x24] sm:$0xf0]  ;;  %v504_v42 = vld [vmem:[#allocation2 + $0x60] sm:$0xf] }
  0x18   :  { %v501_v39 = vor.u32 %v592_v34, %v498_v35  ;;  %v595_v43 = vld [vmem:[#allocation2 + $0x64] sm:$0xf0]  ;;  %v586_v44 = vld [vmem:[#allocation2 + $0x24] sm:$0xf]  ;;  %v474_v45 = vld [vmem:[#allocation2 + $0x28] sm:$0xf0]  ;;  %v473_v48 = vor.u32 %v587_v41, %v472_v40 }
  0x19   :  { %307 = vmatpush.bf16.msra.mxu0 %v602_v6  ;;  %617 = vmatpush.bf16.msra.mxu2 %v602_v6  ;;  %v594_v46 = vld [vmem:[#allocation2 + $0x64] sm:$0xf]  ;;  %v506_v47 = vld [vmem:[#allocation2 + $0x68] sm:$0xf0]  ;;  %v505_v49 = vor.u32 %v595_v43, %v504_v42  ;;  %v477_v50 = vor.u32 %v586_v44, %v474_v45  ;;  %v480_v52 = vld [vmem:[#allocation2 + $0x30] sm:$0xf] }
  0x1a   :  { %356 = vmatpush.bf16.msra.mxu1 %v610_v7  ;;  %625 = vmatpush.bf16.msra.mxu3 %v610_v7  ;;  %v509_v51 = vor.u32 %v594_v46, %v506_v47  ;;  %v589_v53 = vld [vmem:[#allocation2 + $0x34] sm:$0xf0]  ;;  %v512_v54 = vld [vmem:[#allocation2 + $0x70] sm:$0xf]  ;;  %v588_v56 = vld [vmem:[#allocation2 + $0x34] sm:$0xf] }
  0x1b   :  { %v597_v55 = vld [vmem:[#allocation2 + $0x74] sm:$0xf0]  ;;  %v482_v57 = vld [vmem:[#allocation2 + $0x38] sm:$0xf0]  ;;  %v596_v58 = vld [vmem:[#allocation2 + $0x74] sm:$0xf]  ;;  %v481_v60 = vor.u32 %v589_v53, %v480_v52 }
  0x1c   :  { %v514_v59 = vld [vmem:[#allocation2 + $0x78] sm:$0xf0]  ;;  %v513_v61 = vor.u32 %v597_v55, %v512_v54  ;;  %v485_v62 = vor.u32 %v588_v56, %v482_v57 }
  0x1d   :  { %308 = vmatpush.bf16.msra.mxu0 %v601_v8  ;;  %618 = vmatpush.bf16.msra.mxu2 %v601_v8  ;;  %v517_v63 = vor.u32 %v596_v58, %v514_v59 }
  0x1e   :  { %357 = vmatpush.bf16.msra.mxu1 %v609_v9  ;;  %626 = vmatpush.bf16.msra.mxu3 %v609_v9 }
  0x21   :  { %309 = vmatpush.bf16.msra.mxu0 %v600_v10  ;;  %619 = vmatpush.bf16.msra.mxu2 %v600_v10 }
  0x22   :  { %358 = vmatpush.bf16.msra.mxu1 %v608_v11  ;;  %627 = vmatpush.bf16.msra.mxu3 %v608_v11 }
  0x25   :  { %310 = vmatpush.bf16.msra.mxu0 %v599_v12  ;;  %620 = vmatpush.bf16.msra.mxu2 %v599_v12 }
  0x26   :  { %359 = vmatpush.bf16.msra.mxu1 %v607_v13  ;;  %628 = vmatpush.bf16.msra.mxu3 %v607_v13 }
  0x29   :  { %311 = vmatpush.bf16.msra.mxu0 %v598_v14  ;;  %621 = vmatpush.bf16.msra.mxu2 %v598_v14 }
  0x2a   :  { %360 = vmatpush.bf16.msra.mxu1 %v606_v15  ;;  %629 = vmatpush.bf16.msra.mxu3 %v606_v15 }
  0x2c   :  { %312 = vmatmul.bf16.vlgmr.msra.gmra.mxu0 %v457_v24  ;;  %332 = vmatmul.bf16.vlgmr.msra.gmra.mxu2 %v489_v25 }
  0x2d   :  { %361 = vmatmul.bf16.vlgmr.msra.gmra.mxu1 %v461_v26  ;;  %381 = vmatmul.bf16.vlgmr.msra.gmra.mxu3 %v493_v27 }
  0x3c   :  { %317 = vmatmul.bf16.gmra.mxu0 %v465_v36  ;;  %337 = vmatmul.bf16.gmra.mxu2 %v497_v37 }
  0x3d   :  { %366 = vmatmul.bf16.gmra.mxu1 %v469_v38  ;;  %386 = vmatmul.bf16.gmra.mxu3 %v501_v39 }
  0x4c   :  { %322 = vmatmul.bf16.gmra.mxu0 %v473_v48  ;;  %342 = vmatmul.bf16.gmra.mxu2 %v505_v49 }
  0x4d   :  { %371 = vmatmul.bf16.gmra.mxu1 %v477_v50  ;;  %391 = vmatmul.bf16.gmra.mxu3 %v509_v51 }
  0x5c   :  { %327 = vmatmul.bf16.gmra.mxu0 %v481_v60  ;;  %347 = vmatmul.bf16.gmra.mxu2 %v513_v61 }
  0x5d   :  { %376 = vmatmul.bf16.gmra.mxu1 %v485_v62  ;;  %396 = vmatmul.bf16.gmra.mxu3 %v517_v63 }
  0xa9   :  { %v313_v0 = vpop.f32.mrf.mxu0 }
  0xaa   :  { %v362_v1 = vpop.f32.mrf.mxu1 }
  0xab   :  { %v363_v2 = vadd.f32 %v362_v1, %v313_v0 }
  0xad   :  { %418 = vst [vmem:[#allocation7] sm:$0xff] %v363_v2 }
  0xaf   :  { %v333_v3 = vpop.f32.mrf.mxu2 }
  0xb0   :  { %v382_v4 = vpop.f32.mrf.mxu3 }
  0xb1   :  { %v383_v5 = vadd.f32 %v382_v4, %v333_v3  ;;  %v315_v6 = vpop.f32.mrf.mxu0 }
  0xb2   :  { %v364_v7 = vpop.f32.mrf.mxu1 }
  0xb3   :  { %v365_v8 = vadd.f32 %v364_v7, %v315_v6  ;;  %426 = vst [vmem:[#allocation7 + $0x40] sm:$0xff] %v383_v5 }
  0xb5   :  { %419 = vst [vmem:[#allocation7 + $0x8] sm:$0xff] %v365_v8 }
  0xb7   :  { %v335_v9 = vpop.f32.mrf.mxu2 }
  0xb8   :  { %v384_v10 = vpop.f32.mrf.mxu3 }
  0xb9   :  { %v385_v11 = vadd.f32 %v384_v10, %v335_v9  ;;  %v318_v12 = vpop.f32.mrf.mxu0 }
  0xba   :  { %v367_v13 = vpop.f32.mrf.mxu1 }
  0xbb   :  { %v368_v14 = vadd.f32 %v367_v13, %v318_v12  ;;  %427 = vst [vmem:[#allocation7 + $0x48] sm:$0xff] %v385_v11 }
  0xbd   :  { %420 = vst [vmem:[#allocation7 + $0x10] sm:$0xff] %v368_v14 }
  0xbf   :  { %v338_v15 = vpop.f32.mrf.mxu2 }
  0xc0   :  { %v387_v16 = vpop.f32.mrf.mxu3 }
  0xc1   :  { %v388_v17 = vadd.f32 %v387_v16, %v338_v15  ;;  %v320_v18 = vpop.f32.mrf.mxu0 }
  0xc2   :  { %v369_v19 = vpop.f32.mrf.mxu1 }
  0xc3   :  { %v370_v20 = vadd.f32 %v369_v19, %v320_v18  ;;  %428 = vst [vmem:[#allocation7 + $0x50] sm:$0xff] %v388_v17 }
  0xc5   :  { %421 = vst [vmem:[#allocation7 + $0x18] sm:$0xff] %v370_v20 }
  0xc7   :  { %v340_v21 = vpop.f32.mrf.mxu2 }
  0xc8   :  { %v389_v22 = vpop.f32.mrf.mxu3 }
  0xc9   :  { %v390_v23 = vadd.f32 %v389_v22, %v340_v21  ;;  %v323_v24 = vpop.f32.mrf.mxu0 }
  0xca   :  { %v372_v25 = vpop.f32.mrf.mxu1 }
  0xcb   :  { %v373_v26 = vadd.f32 %v372_v25, %v323_v24  ;;  %429 = vst [vmem:[#allocation7 + $0x58] sm:$0xff] %v390_v23 }
  0xcd   :  { %422 = vst [vmem:[#allocation7 + $0x20] sm:$0xff] %v373_v26 }
  0xcf   :  { %v343_v27 = vpop.f32.mrf.mxu2 }
  0xd0   :  { %v392_v28 = vpop.f32.mrf.mxu3 }
  0xd1   :  { %v393_v29 = vadd.f32 %v392_v28, %v343_v27  ;;  %v325_v30 = vpop.f32.mrf.mxu0 }
  0xd2   :  { %v374_v31 = vpop.f32.mrf.mxu1 }
  0xd3   :  { %v375_v32 = vadd.f32 %v374_v31, %v325_v30  ;;  %430 = vst [vmem:[#allocation7 + $0x60] sm:$0xff] %v393_v29 }
  0xd5   :  { %423 = vst [vmem:[#allocation7 + $0x28] sm:$0xff] %v375_v32 }
  0xd7   :  { %v345_v33 = vpop.f32.mrf.mxu2 }
  0xd8   :  { %v394_v34 = vpop.f32.mrf.mxu3 }
  0xd9   :  { %v395_v35 = vadd.f32 %v394_v34, %v345_v33  ;;  %v328_v36 = vpop.f32.mrf.mxu0 }
  0xda   :  { %v377_v37 = vpop.f32.mrf.mxu1 }
  0xdb   :  { %v378_v38 = vadd.f32 %v377_v37, %v328_v36  ;;  %431 = vst [vmem:[#allocation7 + $0x68] sm:$0xff] %v395_v35 }
  0xdd   :  { %424 = vst [vmem:[#allocation7 + $0x30] sm:$0xff] %v378_v38 }
  0xdf   :  { %v348_v39 = vpop.f32.mrf.mxu2 }
  0xe0   :  { %v397_v40 = vpop.f32.mrf.mxu3 }
  0xe1   :  { %v398_v41 = vadd.f32 %v397_v40, %v348_v39  ;;  %v330_v42 = vpop.f32.mrf.mxu0 }
  0xe2   :  { %v379_v43 = vpop.f32.mrf.mxu1 }
  0xe3   :  { %v380_v44 = vadd.f32 %v379_v43, %v330_v42  ;;  %432 = vst [vmem:[#allocation7 + $0x70] sm:$0xff] %v398_v41 }
  0xe5   :  { %425 = vst [vmem:[#allocation7 + $0x38] sm:$0xff] %v380_v44 }
  0xe7   :  { %v350_v45 = vpop.f32.mrf.mxu2 }
  0xe8   :  { %v399_v46 = vpop.f32.mrf.mxu3 }
  0xe9   :  { %v400_v47 = vadd.f32 %v399_v46, %v350_v45 }
  0xeb   :  { %433 = vst [vmem:[#allocation7 + $0x78] sm:$0xff] %v400_v47 }
  0xec   :  { %446 = dma.vmem_to_hbm [thread:$0]  %s439_s22, 2048, %s441_s25, [#allocation4], %s717_s17, %s717_s17, %s718_s18  }
  0xed   :  { %714 = dma.done.wait [#allocation4], 2048  }
  0xee   :  { %715 = vsyncadd [#allocation4], 4294965248 }
  0xef   :  { %451 = vsyncpa [#allocation3], 1 }
  0xf0   :  { %452 = vsyncpa [#allocation6], 1 }
  0xf1   :  { %453 = vsyncpa [#allocation4], 1 }

</bundles_post_ra>
